<compile_context>
chip_gen: v6e
topology: v6e:2x2x1
jax: 0.10.0
libtpu: 0.0.40
codegen_flags: <defaults>
</compile_context>

<pallas_src>
import functools
import math

import jax
import jax.numpy as jnp
from jax.experimental import pallas as pl
from jax.experimental.pallas import tpu as pltpu

_LANE = 128
_SUBLANE = 8


def _cdiv(a, b):
    return -(-a // b)


def _round_up(x, m):
    return _cdiv(x, m) * m


def _decoder_kernel(h_ref, w_ref, b_ref, o_ref, *, gain):
    # h_ref: (TM, Dp)  w_ref: (Dp, TN)  b_ref: (1, TN)  o_ref: (TM, TN)
    acc = jnp.dot(h_ref[...], w_ref[...], preferred_element_type=jnp.float32)
    o_ref[...] = (acc * gain + b_ref[...].astype(jnp.float32)).astype(o_ref.dtype)


def _vmem_budget():
    """Generation-aware VMEM sizing: (tile budget, scoped vmem limit)."""
    try:
        cap = int(pltpu.get_tpu_info().vmem_capacity_bytes)
    except Exception:
        cap = 64 * 1024 * 1024  # conservative fallback (v7x per-TC VMEM)
    return int(cap * 0.70), int(cap * 0.85)


def _choose_tiles(m, d_pad, w_bytes, h_bytes, o_bytes, budget):
    """Pick (TM, TN).

    TN == d_pad -> W (+bias) stays VMEM-resident across all row tiles.
    TN <  d_pad -> W is streamed in (d_pad, TN) column tiles (2-D grid).

    Default Pallas pipelining allocates 2 buffers even for constant-index
    blocks, so the resident W/bias are counted twice (robust on v7x's 64 MiB).
    """
    resident = 2 * (d_pad * d_pad * w_bytes + d_pad * 4)      # W + f32 bias
    per_row_res = 2 * d_pad * (h_bytes + o_bytes)             # h + out rows
    avail = budget - resident
    if avail >= per_row_res * _LANE:          # resident-W with TM >= 128 rows
        tn = d_pad
        tm_cap = min(avail // per_row_res, 1024)
    else:                                     # stream W column tiles
        tn = min(d_pad, 4 * _LANE)
        while tn > _LANE:
            need = (2 * tn * (d_pad * w_bytes + 4)
                    + 2 * _LANE * (d_pad * h_bytes + tn * o_bytes))
            if need <= budget:
                break
            tn -= _LANE
        fixed = 2 * tn * (d_pad * w_bytes + 4)
        per_row = 2 * (d_pad * h_bytes + tn * o_bytes)
        tm_cap = min(max((budget - fixed) // per_row, _SUBLANE), 1024)
    tm_cap = max(_SUBLANE, (int(tm_cap) // _SUBLANE) * _SUBLANE)
    # Keep >= 2 row tiles so the "parallel" axis can shard across v7x's 2 TCs.
    if m >= 2 * _SUBLANE:
        tm_cap = min(tm_cap, _round_up(_cdiv(m, 2), _SUBLANE))
    # Balance row tiles so the ragged last tile is not mostly padding.
    n_tiles = _cdiv(m, tm_cap)
    tm = min(_round_up(_cdiv(m, n_tiles), _SUBLANE), tm_cap)
    return tm, tn


def linear_decoder_rnn_forward(h, W, bias, gain, *, compute_dtype=None,
                               force_kernel=False):
    """h: [B, T, D]; W: [D, D]; bias: [1, D]; gain: python float."""
    B, T, D = h.shape
    M = B * T
    out_dtype = h.dtype

    # Small-problem fast path: lane-padding tiny D and kernel launch overhead
    # lose to a plain fused XLA matmul at these sizes.
    if not force_kernel and (D < 2 * _LANE or M * D < _LANE * _LANE):
        out = jnp.dot(h.reshape(M, D), W, preferred_element_type=jnp.float32)
        out = (out * gain + bias.astype(jnp.float32)).astype(out_dtype)
        return out.reshape(B, T, D)

    h2 = h.reshape(M, D)
    Wp = W
    if compute_dtype is not None:
        h2 = h2.astype(compute_dtype)
        Wp = Wp.astype(compute_dtype)
    bp = bias.astype(jnp.float32)

    # Lane-dense padding only when needed (decoder dims are usually 128-mult).
    Dp = _round_up(D, _LANE)
    if Dp != D:
        h2 = jnp.pad(h2, ((0, 0), (0, Dp - D)))
        Wp = jnp.pad(Wp, ((0, Dp - D), (0, Dp - D)))
        bp = jnp.pad(bp, ((0, 0), (0, Dp - D)))

    budget, vmem_limit = _vmem_budget()
    TM, TN = _choose_tiles(
        M, Dp,
        jnp.dtype(Wp.dtype).itemsize,
        jnp.dtype(h2.dtype).itemsize,
        jnp.dtype(out_dtype).itemsize,
        budget)
    Mi, Nj = _cdiv(M, TM), _cdiv(Dp, TN)

    out2 = pl.pallas_call(
        functools.partial(_decoder_kernel, gain=gain),
        out_shape=jax.ShapeDtypeStruct((M, Dp), out_dtype),
        grid_spec=pltpu.PrefetchScalarGridSpec(
            num_scalar_prefetch=0,
            grid=(Mi, Nj),
            in_specs=[
                # h row tile: block index constant across j -> fetched once per i.
                pl.BlockSpec((TM, Dp), lambda i, j: (i, 0)),
                # W column tile (whole W when Nj == 1, i.e. VMEM-resident).
                pl.BlockSpec((Dp, TN), lambda i, j: (0, j)),
                # bias slice matching the W columns.
                pl.BlockSpec((1, TN), lambda i, j: (0, j)),
            ],
            out_specs=pl.BlockSpec((TM, TN), lambda i, j: (i, j)),
        ),
        compiler_params=pltpu.CompilerParams(
            dimension_semantics=("parallel", "arbitrary"),
            vmem_limit_bytes=vmem_limit,
        ),
    )(h2, Wp, bp)

    if Dp != D:
        out2 = out2[:, :D]
    return out2.reshape(B, T, D)


def init_params(key, decoder_dim, init_gain=1.0):
    """Matches low_rank(rank=-1, 'randn', implicit_gain=False) + decoder_bias."""
    W = (jax.random.normal(key, (decoder_dim, decoder_dim), jnp.float32)
         * math.sqrt(decoder_dim) * init_gain)
    bias = jnp.zeros((1, decoder_dim), jnp.float32)   # decoder_bias=True
    gain = 1.0 / decoder_dim
    return W, bias, gain


if __name__ == "__main__":
    root = jax.random.PRNGKey(0)
    k1, k2, k3, k4, k5, k6 = jax.random.split(root, 6)

    def reference(h, W, bias, gain):
        B, T, D = h.shape
        r = (h.reshape(-1, D) @ W) * gain + bias
        return r.reshape(B, T, D)

    # 1) Small shape consistent with the module (hits the XLA fast path).
    B, T, D = 2, 8, 32
    h_s = jax.random.normal(k1, (B, T, D), jnp.float32)
    W_s, _, g_s = init_params(k2, D)
    b_s = 0.1 * jax.random.normal(k3, (1, D), jnp.float32)
    out_s = jax.block_until_ready(linear_decoder_rnn_forward(h_s, W_s, b_s, g_s))
    assert jnp.allclose(out_s, reference(h_s, W_s, b_s, g_s),
                        atol=1e-4, rtol=1e-4), "fast-path mismatch"

    # 2) Same small shape forced through the Pallas kernel
    #    (exercises the lane-padding path + small row tiles).
    out_p = jax.block_until_ready(
        linear_decoder_rnn_forward(h_s, W_s, b_s, g_s, force_kernel=True))
    assert jnp.allclose(out_p, reference(h_s, W_s, b_s, g_s),
                        atol=1e-4, rtol=1e-4), "padded-kernel mismatch"

    # 3) Kernel path proper: D multiple of 128 (no pads), ragged row tiles,
    #    >= 2 "parallel" row tiles.
    B, T, D = 2, 60, 256
    h_l = jax.random.normal(k4, (B, T, D), jnp.float32)
    W_l, _, g_l = init_params(k5, D)
    b_l = 0.1 * jax.random.normal(k6, (1, D), jnp.float32)
    out_l = jax.block_until_ready(linear_decoder_rnn_forward(h_l, W_l, b_l, g_l))
    assert jnp.allclose(out_l, reference(h_l, W_l, b_l, g_l),
                        atol=1e-3, rtol=1e-3), "kernel mismatch"

    print("KERNEL_OK")
</pallas_src>

<mosaic_0001>
module attributes {stable_mosaic.version = 11 : i64} {
  func.func @_decoder_kernel(%arg0: i32, %arg1: i32, %arg2: memref<8x128xf32, #tpu.memory_space<vmem>>, %arg3: memref<128x128xf32, #tpu.memory_space<vmem>>, %arg4: memref<1x128xf32, #tpu.memory_space<vmem>>, %arg5: memref<8x128xf32, #tpu.memory_space<vmem>>) attributes {dimension_semantics = [#tpu.dimension_semantics<parallel>, #tpu.dimension_semantics<arbitrary>], iteration_bounds = array<i64: 2, 1>, scalar_prefetch = 0 : i64, scratch_operands = 0 : i64, tpu.core_type = #tpu.core_type<tc>, window_params = [{transform_indices = @transform_0, window_bounds = array<i64: 8, 128>}, {transform_indices = @transform_1, window_bounds = array<i64: 128, 128>}, {transform_indices = @transform_2, window_bounds = array<i64: 1, 128>}, {transform_indices = @transform_3, window_bounds = array<i64: 8, 128>}]} {
    %c0 = arith.constant 0 : index
    %c0_0 = arith.constant 0 : index
    %0 = vector.load %arg2[%c0, %c0_0] : memref<8x128xf32, #tpu.memory_space<vmem>>, vector<8x128xf32>
    %c0_1 = arith.constant 0 : index
    %c0_2 = arith.constant 0 : index
    %1 = vector.load %arg3[%c0_1, %c0_2] : memref<128x128xf32, #tpu.memory_space<vmem>>, vector<128x128xf32>
    %cst = arith.constant dense<0.000000e+00> : vector<8x128xf32>
    %2 = tpu.matmul %0, %1, %cst {dimension_numbers = #tpu.dot_dimension_numbers<[1], [0], [0], [1], [0, 0, 1, 1], [], []>} : vector<8x128xf32>, vector<128x128xf32>, vector<8x128xf32> -> vector<8x128xf32>
    %cst_3 = arith.constant 3.125000e-02 : f32
    %3 = vector.broadcast %cst_3 : f32 to vector<8x128xf32>
    %4 = arith.mulf %2, %3 : vector<8x128xf32>
    %c0_4 = arith.constant 0 : index
    %c0_5 = arith.constant 0 : index
    %5 = vector.load %arg4[%c0_4, %c0_5] : memref<1x128xf32, #tpu.memory_space<vmem>>, vector<1x128xf32>
    %6 = vector.broadcast %5 : vector<1x128xf32> to vector<8x128xf32>
    %7 = arith.addf %4, %6 : vector<8x128xf32>
    %c0_6 = arith.constant 0 : index
    %c0_7 = arith.constant 0 : index
    %8 = vector.load %arg5[%c0_6, %c0_7] : memref<8x128xf32, #tpu.memory_space<vmem>>, vector<8x128xf32>
    tpu.vector_store %arg5[%c0_6, %c0_7], %7 {strides = array<i32>} : memref<8x128xf32, #tpu.memory_space<vmem>>, vector<8x128xf32>,
    return
  }
  func.func @transform_0(%arg0: i32, %arg1: i32) -> (i32, i32) {
    %c0_i32 = arith.constant 0 : i32
    %c0_i32_0 = arith.constant 0 : i32
    return %arg0, %c0_i32 : i32, i32
  }
  func.func @transform_1(%arg0: i32, %arg1: i32) -> (i32, i32) {
    %c0_i32 = arith.constant 0 : i32
    %c0_i32_0 = arith.constant 0 : i32
    return %c0_i32, %arg1 : i32, i32
  }
  func.func @transform_2(%arg0: i32, %arg1: i32) -> (i32, i32) {
    %c0_i32 = arith.constant 0 : i32
    %c0_i32_0 = arith.constant 0 : i32
    return %c0_i32, %arg1 : i32, i32
  }
  func.func @transform_3(%arg0: i32, %arg1: i32) -> (i32, i32) {
    %c0_i32 = arith.constant 0 : i32
    return %arg0, %arg1 : i32, i32
  }
}

</mosaic_0001>

<bundles_post_ra>
// kernel: tpu_custom_call.1
= control target key start
LH: loop header
LB: loop body
LE: loop exit
PB: predicated region body
PF: predicated region fallthrough
CT: control target
= control target key end

     0   :  { %8 = vsyncpa [#allocation3], 0  ;;  %s941_s0 = inlined_call_operand.hbm [shape: f32[16,128], index: 0, kind: input, shape index: {}]   ;;  %s942_s1 = inlined_call_operand.hbm [shape: f32[128,128], index: 1, kind: input, shape index: {}]   ;;  %s943_s2 = inlined_call_operand.vmem [shape: f32[1,128], index: 2, kind: input, shape index: {}]   ;;  %s944_s3 = inlined_call_operand.hbm [shape: f32[16,128], index: 3, kind: output, shape index: {}]  }
   0x1   :  { %10 = vsyncpa [#allocation3 + $0x1], 0 }
   0x2   :  { %11 = vsyncpa [#allocation6], 0 }
   0x3   :  { %12 = vsyncpa [#allocation4], 0 }
   0x4   :  { %14 = vsyncpa [#allocation4 + $0x1], 0  ;;  %s764_s12 = smov 0   ;;  %s766_s13 = smov 0  }
   0x5   :  { %s768_s14 = smov 0   ;;  %s770_s15 = smov 0  }
   0x6   :  { %s772_s16 = smov 0   ;;  %s774_s17 = smov 0  }
   0x7 LB: > { %s451_s18 = sadd.s32 4294967295, %s735_s17   ;;  %s452_s19 = sadd.s32 4294967294, %s735_s17   ;;  %s735_s17 = sphi %s774_s17, %s20_s17   ;;  %s731_s16 = sphi %s772_s16, %s962_s16   ;;  %s727_s15 = sphi %s770_s15, %s961_s15   ;;  %s723_s14 = sphi %s768_s14, %s960_s14   ;;  %s719_s13 = sphi %s766_s13, %s959_s13   ;;  %s715_s12 = sphi %s764_s12, %s958_s12  }
   0x8   : > { %p52_p0 = scmp.ne.s32.totalorder %s719_s13, %s715_s12  ;;  %p798_p1 = scmp.eq.s32.totalorder %s451_s18, 0 }
   0x9   : > { %p802_p2 = scmp.eq.s32.totalorder %s451_s18, 1  ;;  %p136_p3 = scmp.eq.s32.totalorder %s452_s19, 1 }
   0xa   : > { %p808_p4 = por %p798_p1, %p52_p0  ;;  %p453_p5 = scmp.ge.s32.totalorder %s735_s17, 1 }
   0xb   : > { %p813_p6 = por %p136_p3, %p52_p0  ;;  %p143_p7 = scmp.lt.s32.totalorder %s735_s17, 3 }
   0xc   : > { %s948_s22 = scalar_select %p808_p4, 1, 0 }
   0xd   : > { %s949_s23 = scalar_select %p813_p6, 1, 0 }
   0xe   : > { %p818_p8 = pnand %p453_p5, %p143_p7  ;;  %s737_s25 = smov [#allocation5]  }
   0xf   : > { %s157_s26 = sshll.u32 %s737_s25, 4  ;;  %s32_s28 = sadd.s32 1, %s731_s16  ;;  %s158_s26 = int_to_ptr.vmem [resolvable:$true] %s157_s26 }
  0x10   : > { %p528_p9 = pneg %p818_p8  ;;  %s608_s29 = scalar_lea.vmem %s158_s26, 2048 }
  0x11   : > { %p609_p13 = scmp.ne.s32.totalorder %s158_s26, %s608_s29  ;;  %p616_p5 = scmp.lt.s32.totalorder %s158_s26, %s158_s26 }
  0x12   : > { %p827_p11 = pnand %p528_p9, %p798_p1  ;;  %p617_p7 = scmp.lt.s32.totalorder %s608_s29, %s608_s29 }
  0x14   : > { %p599_p12 = pneg %p827_p11  ;;  %p618_p6 = por %p617_p7, %p616_p5 }
  0x16   : > { %p611_p0 = pnand %p609_p13, %p599_p12 }
  0x18   : > { %p612_p3 = pneg %p611_p0 }
  0x1a   : > { %p619_p4 = pnand %p618_p6, %p612_p3 }
  0x1c   : > { %622 = shalt.err (!%p619_p4)
}
  0x1d   : > { %s738_s30 = smov 128   ;;  %s739_s4 = smov 8  }
  0x1e   : > { %531 = dma.hbm_to_vmem [thread:$0]  (!%p827_p11), %s942_s1, 2048, %s158_s26, [#allocation6], %s738_s30, %s738_s30, %s739_s4  }
  0x1f   : > { %p34_p6 = scmp.ge.s32.totalorder %s32_s28, 2  ;;  %s39_s7 = sadd.s32 1, %s723_s14 }
  0x20   : > { %p46_p4 = scmp.ne.s32.totalorder %s723_s14, %s719_s13  ;;  %p47_p9 = scmp.eq.s32.totalorder %s735_s17, 0 }
  0x21   : > { %s964_s28 = smov (%p34_p6, %s32_s28), 0  ;;  %p541_p0 = scmp.lt.s32.totalorder %s735_s17, 2 }
  0x22   : > { %p845_p12 = por %p47_p9, %p46_p4  ;;  %p851_p13 = por %p802_p2, %p46_p4 }
  0x23   : > { %s36_s10 = ssub.s32 %s731_s16, %s964_s28  ;;  %s177_s11 = sand.u32 1, %s723_s14  }
  0x24   : > { %p37_p11 = scmp.eq.s32.totalorder %s36_s10, 0  ;;  %s457_s18 = sshll.u32 %s177_s11, 3 }
  0x25   : > { %s458_s25 = sshll.u32 %s731_s16, 7  ;;  %s181_s30 = scalar_lea.vmem [#allocation2], %s457_s18 }
  0x26   : > { %s860_s19 = scalar_select %p37_p11, %s723_s14, %s39_s7  }
  0x27   : > { %s186_s29 = scalar_lea.hbm %s941_s0, %s458_s25  ;;  %s188_s4 = sshll.u32 %s181_s30, 4  ;;  %s189_s4 = int_to_ptr.vmem [resolvable:$true] %s188_s4 }
  0x28   : > { %p868_p2 = pnand %p541_p0, %p845_p12  ;;  %s178_s5 = scalar_lea.sflag [#allocation3], %s177_s11 }
  0x29   : > { %s636_s6 = scalar_lea.vmem %s189_s4, 128  ;;  %s740_s7 = smov [#allocation2]  }
  0x2a   : > { %p625_p3 = pneg %p868_p2  ;;  %p637_p5 = scmp.ne.s32.totalorder %s189_s4, %s636_s6 }
  0x2b   : > { %s641_s10 = sshll.u32 %s740_s7, 4  ;;  %s642_s10 = int_to_ptr.vmem [resolvable:$false] %s641_s10 }
  0x2c   : > { %p639_p7 = pnand %p637_p5, %p625_p3  ;;  %s643_s25 = scalar_lea.vmem %s642_s10, 256 }
  0x2d   : > { %p644_p4 = scmp.lt.s32.totalorder %s189_s4, %s642_s10  ;;  %p645_p9 = scmp.lt.s32.totalorder %s643_s25, %s636_s6 }
  0x2e   : > { %p640_p6 = pneg %p639_p7 }
  0x2f   : > { %p646_p11 = por %p645_p9, %p644_p4 }
  0x31   : > { %p647_p10 = pnand %p646_p11, %p640_p6 }
  0x33   : > { %650 = shalt.err (!%p647_p10)
}
  0x34   : > { %535 = dma.hbm_to_vmem [thread:$0]  (!%p868_p2), %s186_s29, 128, %s189_s4, %s178_s5  }
  0x35   : > { %197 = sbr.rel (%p818_p8) target bundleno = 304 (0x130), region = 32  ;;  %s879_s8 = sand.u32 (!%p818_p8), 1, %s719_s13  }
  0x36   : > { %s460_s11 = sshll.u32 (!%p818_p8), %s879_s8, 3  ;;  %s200_s18 = scalar_lea.sflag (!%p818_p8), [#allocation3], %s879_s8 }
  0x37   : > { %s885_s26 = scalar_lea.vmem (!%p818_p8), [#allocation2], %s460_s11  ;;  %p955_p12 = scmp.ne.s32.totalorder (!%p818_p8), %s948_s22, 0 }
  0x3a   : > { %702 = dma.done.wait (%p955_p12), %s200_s18, 128  }
  0x3b   : > { %704 = vsyncadd (%p955_p12), %s200_s18, 4294967168 }
  0x3c   : > { %706 = dma.done.wait (%p798_p1), [#allocation6], 2048  }
  0x3d   : > { %708 = vsyncadd (%p798_p1), [#allocation6], 4294965248  ;;  %v741_v0 = vmov 0.0   ;;  %vm742_vm0 = vmmov 0   ;;  %v252_v1 = vld [vmem:[#allocation5 + $0x78] sm:$0xff]  ;;  %v251_v2 = vld [vmem:[#allocation5 + $0x70] sm:$0xff] }
  0x3e   : > { %485 = vmatprep.subr.mxu0 %v741_v0  ;;  %517 = vmatprep.mubr.msk.f32.mxu0 %vm742_vm0, %v741_v0  ;;  %v250_v3 = vld [vmem:[#allocation5 + $0x68] sm:$0xff]  ;;  %v249_v4 = vld [vmem:[#allocation5 + $0x60] sm:$0xff]  ;;  %v248_v5 = vld [vmem:[#allocation5 + $0x58] sm:$0xff]  ;;  %s465_s24 = sshll.u32 %s727_s15, 7  ;;  %s232_s27 = scalar_lea.vmem [#allocation7], %s460_s11 }
  0x3f   : > { %486 = vmatpush3.msra.mxu0 %v252_v1  ;;  %v247_v6 = vld [vmem:[#allocation5 + $0x50] sm:$0xff]  ;;  %v246_v7 = vld [vmem:[#allocation5 + $0x48] sm:$0xff]  ;;  %v245_v8 = vld [vmem:[#allocation5 + $0x40] sm:$0xff]  ;;  %s348_s29 = sshll.u32 %s232_s27, 4  ;;  %s346_s21 = scalar_lea.hbm %s944_s3, %s465_s24  ;;  %s349_s29 = int_to_ptr.vmem [resolvable:$true] %s348_s29 }
  0x40   : > { %487 = vmatprep.subr.mxu0 %v741_v0  ;;  %v244_v9 = vld [vmem:[#allocation5 + $0x38] sm:$0xff]  ;;  %v243_v10 = vld [vmem:[#allocation5 + $0x30] sm:$0xff]  ;;  %v242_v11 = vld [vmem:[#allocation5 + $0x28] sm:$0xff]  ;;  %s334_s5 = scalar_lea.sflag [#allocation4], %s879_s8  ;;  %s651_s6 = scalar_lea.vmem %s349_s29, 128 }
  0x41   : > { %488 = vmatpush3.msra.mxu0 %v251_v2  ;;  %v241_v12 = vld [vmem:[#allocation5 + $0x20] sm:$0xff]  ;;  %v240_v13 = vld [vmem:[#allocation5 + $0x18] sm:$0xff]  ;;  %v239_v14 = vld [vmem:[#allocation5 + $0x10] sm:$0xff]  ;;  %p652_p1 = scmp.ne.s32.totalorder %s349_s29, %s651_s6  ;;  %s743_s7 = smov [#allocation7]  }
  0x42   : > { %489 = vmatprep.subr.mxu0 %v741_v0  ;;  %v238_v15 = vld [vmem:[#allocation5 + $0x8] sm:$0xff]  ;;  %v237_v16 = vld [vmem:[#allocation5] sm:$0xff]  ;;  %v236_v17 = vld [vmem:[%s885_s26] sm:$0xff]  ;;  %s655_s15 = sshll.u32 %s743_s7, 4  ;;  %s656_s15 = int_to_ptr.vmem [resolvable:$false] %s655_s15 }
  0x43   : > { %490 = vmatpush3.msra.mxu0 %v250_v3  ;;  %v463_v19 = vld [vmem:[%s943_s2] ss:$0 sm:$0xff]  ;;  %p653_p8 = pnand %p652_p1, %p851_p13  ;;  %s657_s10 = scalar_lea.vmem %s656_s15, 256 }
  0x44   : > { %491 = vmatprep.subr.mxu0 %v741_v0  ;;  %p658_p0 = scmp.lt.s32.totalorder %s349_s29, %s656_s15  ;;  %p659_p2 = scmp.lt.s32.totalorder %s657_s10, %s651_s6 }
  0x45   : > { %492 = vmatpush3.msra.mxu0 %v249_v4  ;;  %p654_p10 = pneg %p653_p8 }
  0x46   : > { %493 = vmatprep.subr.mxu0 %v741_v0  ;;  %p660_p3 = por %p659_p2, %p658_p0 }
  0x47   : > { %494 = vmatpush3.msra.mxu0 %v248_v5 }
  0x48   : > { %495 = vmatprep.subr.mxu0 %v741_v0  ;;  %p661_p5 = pnand %p660_p3, %p654_p10 }
  0x49   : > { %496 = vmatpush3.msra.mxu0 %v247_v6 }
  0x4a   : > { %497 = vmatprep.subr.mxu0 %v741_v0 }
  0x4b   : > { %498 = vmatpush3.msra.mxu0 %v246_v7 }
  0x4c   : > { %499 = vmatprep.subr.mxu0 %v741_v0 }
  0x4d   : > { %500 = vmatpush3.msra.mxu0 %v245_v8 }
  0x4e   : > { %501 = vmatprep.subr.mxu0 %v741_v0 }
  0x4f   : > { %502 = vmatpush3.msra.mxu0 %v244_v9 }
  0x50   : > { %503 = vmatprep.subr.mxu0 %v741_v0 }
  0x51   : > { %504 = vmatpush3.msra.mxu0 %v243_v10 }
  0x52   : > { %505 = vmatprep.subr.mxu0 %v741_v0 }
  0x53   : > { %506 = vmatpush3.msra.mxu0 %v242_v11 }
  0x54   : > { %507 = vmatprep.subr.mxu0 %v741_v0 }
  0x55   : > { %508 = vmatpush3.msra.mxu0 %v241_v12 }
  0x56   : > { %509 = vmatprep.subr.mxu0 %v741_v0 }
  0x57   : > { %510 = vmatpush3.msra.mxu0 %v240_v13 }
  0x58   : > { %511 = vmatprep.subr.mxu0 %v741_v0 }
  0x59   : > { %512 = vmatpush3.msra.mxu0 %v239_v14 }
  0x5a   : > { %513 = vmatprep.subr.mxu0 %v741_v0 }
  0x5b   : > { %514 = vmatpush3.msra.mxu0 %v238_v15 }
  0x5c   : > { %515 = vmatprep.subr.mxu0 %v741_v0 }
  0x5d   : > { %516 = vmatpush3.msra.mxu0 %v237_v16 }
  0x5e   : > { %518 = vmatmul.mubr.f32.vlgmr.msra.gmra.mxu0 %v236_v17 }
 0x11e   : > { %v319_v18 = vpop.f32.mrf.mxu0 }
 0x11f   : > { %v323_v20 = vmul.f32 0.03125, %v319_v18 }
 0x120   : > { %v519_v21 = vpop.f32.mrf.mxu0 }
 0x121   : > { %v331_v22 = vadd.f32 %v463_v19, %v323_v20 }
 0x123   : > { %332 = vst [vmem:[%s232_s27] sm:$0xff] %v331_v22 }
 0x124   : > { %664 = shalt.err (!%p661_p5)
}
 0x125   : > { %s665_s25 = scalar_lea.hbm %s346_s21, 128  ;;  %s669_s18 = scalar_lea.hbm %s944_s3, 256 }
 0x126   : > { %p666_p7 = scmp.ne.s32.totalorder %s346_s21, %s665_s25  ;;  %p670_p9 = scmp.lt.s32.totalorder %s346_s21, %s944_s3 }
 0x127   : > { %p671_p11 = scmp.lt.s32.totalorder %s669_s18, %s665_s25 }
 0x128   : > { %p667_p6 = pnand %p666_p7, %p851_p13 }
 0x129   : > { %p672_p12 = por %p671_p11, %p670_p9 }
 0x12a   : > { %p668_p4 = pneg %p667_p6 }
 0x12c   : > { %p673_p1 = pnand %p672_p12, %p668_p4 }
 0x12e   : > { %676 = shalt.err (!%p673_p1)
}
 0x12f   : > { %526 = dma.vmem_to_hbm [thread:$0]  (%p851_p13), %s349_s29, 128, %s346_s21, %s334_s5  }
 0x130 PF: > { %s360_s22 = sand.u32 1, %s715_s12   ;;  %p956_p8 = scmp.ne.s32.totalorder %s949_s23, 0 }
 0x131   : > { %p957_p10 = scmp.ge.s32.totalorder %s735_s17, 2  ;;  %s361_s24 = scalar_lea.sflag [#allocation4], %s360_s22 }
 0x133   : > { %p537_p0 = pnand %p957_p10, %p956_p8 }
 0x135   : > { %p538_p2 = pneg %p537_p0 }
 0x137   : > { %710 = dma.done.wait (%p538_p2), %s361_s24, 128  }
 0x138   : > { %712 = vsyncadd (%p538_p2), %s361_s24, 4294967168  ;;  %s20_s17 = sadd.s32 1, %s735_s17   ;;  %s958_s12 = smov %s719_s13 }
 0x139   : > { %p17_p3 = scmp.ge.s32.totalorder %s20_s17, 4   ;;  %s959_s13 = smov %s723_s14 }
 0x13a   : > { %s960_s14 = smov %s860_s19  ;;  %s961_s15 = smov %s731_s16 }
 0x13b   : > { %s962_s16 = smov %s964_s28  ;;  %19 = sbr.rel (!%p17_p3) target bundleno = 7 (0x7), region = 85 }
 0x140   :  { %366 = vsyncpa [#allocation3], 1 }
 0x141   :  { %368 = vsyncpa [#allocation3 + $0x1], 1 }
 0x142   :  { %369 = vsyncpa [#allocation6], 1 }
 0x143   :  { %370 = vsyncpa [#allocation4], 1 }
 0x144   :  { %372 = vsyncpa [#allocation4 + $0x1], 1 }

</bundles_post_ra>
